<compile_context>
chip_gen: v5e
topology: v5e:2x2
jax: 0.10.0
libtpu: 0.0.40
codegen_flags: <defaults>
</compile_context>

<pallas_src>
import functools

import jax
import jax.numpy as jnp
from jax.experimental import pallas as pl
from jax.experimental.pallas import tpu as pltpu

_LANE = 128
_SUBLANE = 8


def _round_up(x, m):
    return (x + m - 1) // m * m


def _device_kind():
    try:
        return jax.devices()[0].device_kind.lower()
    except Exception:
        return ""


def _vmem_budget_bytes(kind):
    """Per-generation scoped-VMEM budget (conservative, safe fallbacks)."""
    if "v7" in kind:
        return 48 * 1024 * 1024          # v7x: 64 MiB physical per TC
    if "v2" in kind or "v3" in kind:
        return 12 * 1024 * 1024          # old chips: tiny VMEM
    if any(tag in kind for tag in ("v4", "v5", "v6")):
        return 80 * 1024 * 1024          # v4/v5e/v6e: 128 MiB physical
    return 32 * 1024 * 1024              # unknown: stick near the default scoped cap


def _pick_tile_rows(rows_per_group, k_pad, d_pad, bg_pad, vmem_budget, n_bufs):
    """Largest patch-row tile (multiple of 8, <= 2048) whose working set fits."""
    # streamed bf16 patches (n_bufs-buffered) + f32 emb temp + f32 sel column
    per_row = n_bufs * 2 * k_pad + 4 * d_pad + 4 * bg_pad
    # resident: wp bf16 (double-buffered), bp, the resident f32 output block, slack
    resident = 2 * 2 * k_pad * d_pad + 8 * d_pad + 4 * bg_pad * d_pad + (4 << 20)
    avail = vmem_budget - resident
    tile = avail // per_row if avail > 0 else 256
    tile = int(min(tile, 2048, _round_up(rows_per_group, _SUBLANE)))
    return max(_SUBLANE, (tile // _SUBLANE) * _SUBLANE)


def _clip_encoder_kernel(patches_ref, wp_ref, bp_ref, out_ref, *,
                         n_patches, tile_rows, bg_pad):
    """One (batch-group, row-tile) step: patch-embed + GELU, accumulate per-batch
    pooled sums directly into the resident f32 output block."""
    k = pl.program_id(1)

    @pl.when(k == 0)
    def _init():
        out_ref[...] = jnp.zeros_like(out_ref)

    # Patch embedding (== Conv2d(C, D, kernel=p, stride=p)): bf16 MXU, f32 acc.
    emb = jnp.dot(patches_ref[...], wp_ref[...],
                  preferred_element_type=jnp.float32)
    # NOTE: torch.nn.GELU defaults to the exact erf form; this synthetic encoder
    # uses jax.nn.gelu's tanh approximation consistently in kernel AND reference.
    emb = jax.nn.gelu(emb + bp_ref[...])

    # Per-batch sum pooling as a small one-hot matmul.  Row j of this tile is
    # global (within-group) patch row k*tile_rows + j and belongs to batch
    # (k*tile_rows + j) // n_patches; expressed as a range test so there are no
    # per-element integer divides.  Zero-padded tail rows imply batch ids
    # >= bg_pad and get an all-zero sel column; zero-padded *batches* only touch
    # output rows the wrapper slices off.
    jloc = jax.lax.broadcasted_iota(jnp.int32, (bg_pad, tile_rows), 1)
    bidx = jax.lax.broadcasted_iota(jnp.int32, (bg_pad, tile_rows), 0)
    lo = bidx * n_patches - k * tile_rows
    sel = jnp.logical_and(jloc >= lo, jloc < lo + n_patches).astype(jnp.float32)
    out_ref[...] += jnp.dot(sel, emb, preferred_element_type=jnp.float32)


def prepare_params(params):
    """One-time weight prep (hoisted out of the forward path): fold the CLIP
    projection and classifier into a single (D, n_cls) head, pad/cast the
    patch-embed weights for the kernel."""
    wp, bp, wproj, wlin, blin = (params["wp"], params["bp"], params["wproj"],
                                 params["wlin"], params["blin"])
    patch_dim, D = wp.shape
    n_cls = wlin.shape[1]
    k_pad = _round_up(patch_dim, _LANE)
    d_pad = _round_up(D, _LANE)
    w_head = jnp.dot(wproj, wlin, precision=jax.lax.Precision.HIGHEST)
    return {
        "wp_pad": jnp.pad(wp, ((0, k_pad - patch_dim), (0, d_pad - D))).astype(jnp.bfloat16),
        "bp_pad": jnp.pad(bp.reshape(1, D), ((0, 0), (0, d_pad - D))).astype(jnp.float32),
        "w_head": w_head.astype(jnp.float32),            # (D, n_cls), unpadded
        "blin":   blin.reshape(1, n_cls).astype(jnp.float32),
    }


def clip_wrapper_forward(x, prepared, *, patch):
    """x: (B, C, H, W) float32 NCHW.  Returns (B, n_cls) float32."""
    B, C, H, W = x.shape
    p = patch
    assert H % p == 0 and W % p == 0
    Ph, Pw = H // p, W // p
    P = Ph * Pw
    patch_dim = C * p * p

    wp_pad, bp_pad = prepared["wp_pad"], prepared["bp_pad"]
    w_head, blin = prepared["w_head"], prepared["blin"]
    k_pad, d_pad = wp_pad.shape
    D, _ = w_head.shape
    assert k_pad == _round_up(patch_dim, _LANE)

    # ---- glue: extract non-overlapping patches, channel-major like a Conv2d
    # weight (D, C, p, p) flattened to (C*p*p, D).
    # TODO(synk): at real image sizes, fold this transpose/pad/bf16 cast into the
    # kernel's input DMA (allow_input_fusion / in-kernel gather) to avoid an
    # extra HBM pass over the activations.
    patches = x.reshape(B, C, Ph, p, Pw, p).transpose(0, 2, 4, 1, 3, 5)
    patches = patches.reshape(B * P, patch_dim)

    # ---- batch grouping: leading "parallel" grid axis so v7x's two TensorCores
    # split the work (harmless serial iteration on 1-TC v5e/v6e).
    n_groups = 2 if B >= 16 else 1
    bg_pad = _round_up(-(-B // n_groups), _SUBLANE)       # batches per group, sublane-aligned
    b_pad = n_groups * bg_pad
    rows_per_group = bg_pad * P

    kind = _device_kind()
    budget = _vmem_budget_bytes(kind)
    n_bufs = 3 if "v5" in kind else 2                     # deeper input buffering on low-BW v5e
    tile_rows = _pick_tile_rows(rows_per_group, k_pad, d_pad, bg_pad, budget, n_bufs)
    tiles_per_group = pl.cdiv(rows_per_group, tile_rows)
    rows_pad = tiles_per_group * tile_rows

    # ---- pad + cast the streamed input: (n_groups, rows_pad, k_pad) bf16.
    patches = jnp.pad(patches, ((0, b_pad * P - B * P), (0, k_pad - patch_dim)))
    patches = patches.reshape(n_groups, rows_per_group, k_pad)
    patches = jnp.pad(patches, ((0, 0), (0, rows_pad - rows_per_group), (0, 0)))
    patches = patches.astype(jnp.bfloat16)

    kernel = functools.partial(_clip_encoder_kernel, n_patches=P,
                               tile_rows=tile_rows, bg_pad=bg_pad)

    patches_spec = pl.BlockSpec((None, tile_rows, k_pad), lambda g, k: (g, k, 0))
    if n_bufs != 2:
        patches_spec = pl.BlockSpec((None, tile_rows, k_pad), lambda g, k: (g, k, 0),
                                    pipeline_mode=pl.Buffered(n_bufs))

    total_rows = n_groups * rows_pad
    cost = pl.CostEstimate(
        flops=int(2 * total_rows * k_pad * d_pad + 2 * total_rows * bg_pad * d_pad),
        transcendentals=int(total_rows * d_pad),
        bytes_accessed=int(total_rows * k_pad * 2 + k_pad * d_pad * 2
                           + d_pad * 4 + b_pad * d_pad * 4),
    )

    pooled = pl.pallas_call(
        kernel,
        out_shape=jax.ShapeDtypeStruct((b_pad, d_pad), jnp.float32),
        grid=(n_groups, tiles_per_group),
        in_specs=[
            patches_spec,                                          # streamed patch rows
            pl.BlockSpec((k_pad, d_pad), lambda g, k: (0, 0)),     # wp (VMEM-resident)
            pl.BlockSpec((1, d_pad), lambda g, k: (0, 0)),         # bp (VMEM-resident)
        ],
        out_specs=pl.BlockSpec((bg_pad, d_pad), lambda g, k: (g, 0)),  # per-group pooled sums
        compiler_params=pltpu.CompilerParams(
            dimension_semantics=("parallel", "arbitrary"),
            vmem_limit_bytes=budget),
        cost_estimate=cost,
    )(patches, wp_pad, bp_pad)

    # ---- tiny epilogue in XLA: mean over patches, fused (wproj @ wlin) head, bias.
    pooled = pooled[:B, :D] * (1.0 / P)
    return jnp.dot(pooled, w_head, precision=jax.lax.Precision.HIGHEST) + blin


def make_params(key, *, C, patch, D, n_cls):
    patch_dim = C * patch * patch
    k1, k2, k3, k4, k5 = jax.random.split(key, 5)
    scale = 0.02
    return {
        "wp":    scale * jax.random.normal(k1, (patch_dim, D), jnp.float32),
        "bp":    scale * jax.random.normal(k2, (1, D), jnp.float32),
        "wproj": scale * jax.random.normal(k3, (D, D), jnp.float32),
        "wlin":  scale * jax.random.normal(k4, (D, n_cls), jnp.float32),
        "blin":  scale * jax.random.normal(k5, (1, n_cls), jnp.float32),
    }


def reference_forward(x, params, *, patch):
    B, C, H, W = x.shape
    p = patch
    Ph, Pw = H // p, W // p
    P = Ph * Pw
    patches = x.reshape(B, C, Ph, p, Pw, p).transpose(0, 2, 4, 1, 3, 5)
    patches = patches.reshape(B * P, C * p * p)
    emb = jax.nn.gelu(patches @ params["wp"] + params["bp"])
    pooled = emb.reshape(B, P, -1).mean(axis=1)
    feats = pooled @ params["wproj"]
    return feats @ params["wlin"] + params["blin"]


if __name__ == "__main__":
    B, C, H, W = 2, 4, 16, 16
    patch = 8
    D = 32          # embed / feature dim
    n_cls = 8       # model_linear output dim

    key = jax.random.PRNGKey(0)
    kx, kp = jax.random.split(key)
    x = jax.random.normal(kx, (B, C, H, W), jnp.float32)
    params = make_params(kp, C=C, patch=patch, D=D, n_cls=n_cls)

    prepared = prepare_params(params)       # one-time weight fold / pad / bf16 cast
    fwd = jax.jit(functools.partial(clip_wrapper_forward, patch=patch))

    out = jax.block_until_ready(fwd(x, prepared))
    ref = reference_forward(x, params, patch=patch)

    assert out.shape == (B, n_cls)
    # bf16 patch-embed inputs bound accuracy to ~1e-3 relative at larger shapes.
    assert jnp.allclose(out, ref, atol=1e-3, rtol=1e-3), float(jnp.max(jnp.abs(out - ref)))

    print("KERNEL_OK")
</pallas_src>

<mosaic_0001>
module attributes {stable_mosaic.version = 11 : i64} {
  func.func @_clip_encoder_kernel(%arg0: i32, %arg1: i32, %arg2: memref<1x32x256xbf16, #tpu.memory_space<vmem>>, %arg3: memref<256x128xbf16, #tpu.memory_space<vmem>>, %arg4: memref<1x128xf32, #tpu.memory_space<vmem>>, %arg5: memref<8x128xf32, #tpu.memory_space<vmem>>) attributes {dimension_semantics = [#tpu.dimension_semantics<parallel>, #tpu.dimension_semantics<arbitrary>], iteration_bounds = array<i64: 1, 1>, scalar_prefetch = 0 : i64, scratch_operands = 0 : i64, tpu.core_type = #tpu.core_type<tc>, window_params = [{transform_indices = @transform_0, window_bounds = array<i64: 1, 32, 256>}, {pipeline_mode = #tpu.pipeline_mode<synchronous>, transform_indices = @transform_1, window_bounds = array<i64: 256, 128>}, {pipeline_mode = #tpu.pipeline_mode<synchronous>, transform_indices = @transform_2, window_bounds = array<i64: 1, 128>}, {transform_indices = @transform_3, window_bounds = array<i64: 8, 128>}]} {
    %c0_i32 = arith.constant 0 : i32
    %0 = arith.cmpi eq, %arg1, %c0_i32 : i32
    %1 = arith.extui %0 : i1 to i32
    %c0_i32_0 = arith.constant 0 : i32
    %2 = arith.cmpi ne, %1, %c0_i32_0 : i32
    scf.if %2 {
      %cst_17 = arith.constant 0.000000e+00 : f32
      %41 = vector.broadcast %cst_17 : f32 to vector<8x128xf32>
      %c0_18 = arith.constant 0 : index
      %c0_19 = arith.constant 0 : index
      %42 = vector.load %arg5[%c0_18, %c0_19] : memref<8x128xf32, #tpu.memory_space<vmem>>, vector<8x128xf32>
      tpu.vector_store %arg5[%c0_18, %c0_19], %41 {strides = array<i32>} : memref<8x128xf32, #tpu.memory_space<vmem>>, vector<8x128xf32>,
    } else {
    }
    %c0 = arith.constant 0 : index
    %c0_1 = arith.constant 0 : index
    %c0_2 = arith.constant 0 : index
    %3 = vector.load %arg2[%c0, %c0_1, %c0_2] : memref<1x32x256xbf16, #tpu.memory_space<vmem>>, vector<1x32x256xbf16>
    %4 = vector.shape_cast %3 : vector<1x32x256xbf16> to vector<32x256xbf16>
    %c0_3 = arith.constant 0 : index
    %c0_4 = arith.constant 0 : index
    %5 = vector.load %arg3[%c0_3, %c0_4] : memref<256x128xbf16, #tpu.memory_space<vmem>>, vector<256x128xbf16>
    %cst = arith.constant dense<0.000000e+00> : vector<32x128xf32>
    %6 = tpu.matmul %4, %5, %cst {dimension_numbers = #tpu.dot_dimension_numbers<[1], [0], [0], [1], [0, 0, 1, 1], [], []>} : vector<32x256xbf16>, vector<256x128xbf16>, vector<32x128xf32> -> vector<32x128xf32>
    %c0_5 = arith.constant 0 : index
    %c0_6 = arith.constant 0 : index
    %7 = vector.load %arg4[%c0_5, %c0_6] : memref<1x128xf32, #tpu.memory_space<vmem>>, vector<1x128xf32>
    %8 = vector.broadcast %7 : vector<1x128xf32> to vector<32x128xf32>
    %9 = arith.addf %6, %8 : vector<32x128xf32>
    %10 = arith.mulf %9, %9 : vector<32x128xf32>
    %11 = arith.mulf %9, %10 : vector<32x128xf32>
    %cst_7 = arith.constant 4.471500e-02 : f32
    %12 = vector.broadcast %cst_7 : f32 to vector<32x128xf32>
    %13 = arith.mulf %12, %11 : vector<32x128xf32>
    %14 = arith.addf %9, %13 : vector<32x128xf32>
    %cst_8 = arith.constant 0.797884583 : f32
    %15 = vector.broadcast %cst_8 : f32 to vector<32x128xf32>
    %16 = arith.mulf %15, %14 : vector<32x128xf32>
    %17 = math.tanh %16 : vector<32x128xf32>
    %cst_9 = arith.constant 1.000000e+00 : f32
    %18 = vector.broadcast %cst_9 : f32 to vector<32x128xf32>
    %19 = arith.addf %18, %17 : vector<32x128xf32>
    %cst_10 = arith.constant 5.000000e-01 : f32
    %20 = vector.broadcast %cst_10 : f32 to vector<32x128xf32>
    %21 = arith.mulf %20, %19 : vector<32x128xf32>
    %22 = arith.mulf %9, %21 : vector<32x128xf32>
    %23 = tpu.iota {dimensions = array<i32: 1>} : vector<8x32xi32>
    %24 = tpu.iota {dimensions = array<i32: 0>} : vector<8x32xi32>
    %c4_i32 = arith.constant 4 : i32
    %25 = vector.broadcast %c4_i32 : i32 to vector<8x32xi32>
    %26 = arith.muli %24, %25 : vector<8x32xi32>
    %c32_i32 = arith.constant 32 : i32
    %27 = arith.muli %arg1, %c32_i32 : i32
    %28 = vector.broadcast %27 : i32 to vector<8x32xi32>
    %29 = arith.subi %26, %28 : vector<8x32xi32>
    %30 = arith.cmpi sge, %23, %29 : vector<8x32xi32>
    %c4_i32_11 = arith.constant 4 : i32
    %31 = vector.broadcast %c4_i32_11 : i32 to vector<8x32xi32>
    %32 = arith.addi %29, %31 : vector<8x32xi32>
    %33 = arith.cmpi slt, %23, %32 : vector<8x32xi32>
    %34 = arith.andi %30, %33 : vector<8x32xi1>
    %35 = arith.extui %34 : vector<8x32xi1> to vector<8x32xi32>
    %36 = arith.sitofp %35 : vector<8x32xi32> to vector<8x32xf32>
    %c0_12 = arith.constant 0 : index
    %c0_13 = arith.constant 0 : index
    %37 = vector.load %arg5[%c0_12, %c0_13] : memref<8x128xf32, #tpu.memory_space<vmem>>, vector<8x128xf32>
    %cst_14 = arith.constant dense<0.000000e+00> : vector<8x128xf32>
    %38 = tpu.matmul %36, %22, %cst_14 {dimension_numbers = #tpu.dot_dimension_numbers<[1], [0], [0], [1], [0, 0, 1, 1], [], []>} : vector<8x32xf32>, vector<32x128xf32>, vector<8x128xf32> -> vector<8x128xf32>
    %39 = arith.addf %37, %38 : vector<8x128xf32>
    %c0_15 = arith.constant 0 : index
    %c0_16 = arith.constant 0 : index
    %40 = vector.load %arg5[%c0_15, %c0_16] : memref<8x128xf32, #tpu.memory_space<vmem>>, vector<8x128xf32>
    tpu.vector_store %arg5[%c0_15, %c0_16], %39 {strides = array<i32>} : memref<8x128xf32, #tpu.memory_space<vmem>>, vector<8x128xf32>,
    return
  }
  func.func @transform_0(%arg0: i32, %arg1: i32) -> (i32, i32, i32) {
    %c0_i32 = arith.constant 0 : i32
    %c0_i32_0 = arith.constant 0 : i32
    return %arg0, %arg1, %c0_i32 : i32, i32, i32
  }
  func.func @transform_1(%arg0: i32, %arg1: i32) -> (i32, i32) {
    %c0_i32 = arith.constant 0 : i32
    %c0_i32_0 = arith.constant 0 : i32
    %c0_i32_1 = arith.constant 0 : i32
    return %c0_i32, %c0_i32_0 : i32, i32
  }
  func.func @transform_2(%arg0: i32, %arg1: i32) -> (i32, i32) {
    %c0_i32 = arith.constant 0 : i32
    %c0_i32_0 = arith.constant 0 : i32
    %c0_i32_1 = arith.constant 0 : i32
    return %c0_i32, %c0_i32_0 : i32, i32
  }
  func.func @transform_3(%arg0: i32, %arg1: i32) -> (i32, i32) {
    %c0_i32 = arith.constant 0 : i32
    %c0_i32_0 = arith.constant 0 : i32
    return %arg0, %c0_i32 : i32, i32
  }
}

</mosaic_0001>

<bundles_post_ra>
// kernel: clip_wrapper_forward.1
= control target key start
LH: loop header
LB: loop body
LE: loop exit
PB: predicated region body
PF: predicated region fallthrough
CT: control target
= control target key end

     0   :  { %v249_v63 = vlaneseq  ;;  %vm264_vm3 = vcmask 261120   ;;  %s528_s1 = inlined_call_operand.vmem [shape: bf16[256,128], index: 1, kind: input, shape index: {}]   ;;  %s529_s2 = inlined_call_operand.vmem [shape: f32[1,128], index: 2, kind: input, shape index: {}]   ;;  %s530_s0 = inlined_call_operand.vmem [shape: bf16[1,32,256], index: 0, kind: input, shape index: {}]   ;;  %s531_s3 = inlined_call_operand.vmem [shape: f32[8,128], index: 3, kind: output, shape index: {}]  }
   0x1   :  { %v387_v0 = vld [vmem:[%s528_s1 + $0x38] sm:$0xff]  ;;  %v386_v2 = vld [vmem:[%s528_s1 + $0x30] sm:$0xff]  ;;  %v385_v4 = vld [vmem:[%s528_s1 + $0x28] sm:$0xff] }
   0x2   :  { %v395_v1 = vld [vmem:[%s528_s1 + $0x78] sm:$0xff]  ;;  %175 = vmatpush.bf16.msra.mxu0 %v387_v0  ;;  %396 = vmatpush.bf16.msra.mxu3 %v387_v0  ;;  %v394_v3 = vld [vmem:[%s528_s1 + $0x70] sm:$0xff]  ;;  %v393_v5 = vld [vmem:[%s528_s1 + $0x68] sm:$0xff] }
   0x3   :  { %404 = vmatpush.bf16.msra.mxu2 %v395_v1  ;;  %194 = vmatpush.bf16.msra.mxu1 %v395_v1  ;;  %v384_v6 = vld [vmem:[%s528_s1 + $0x20] sm:$0xff]  ;;  %v383_v8 = vld [vmem:[%s528_s1 + $0x18] sm:$0xff]  ;;  %v382_v10 = vld [vmem:[%s528_s1 + $0x10] sm:$0xff] }
   0x4   :  { %v392_v7 = vld [vmem:[%s528_s1 + $0x60] sm:$0xff]  ;;  %v391_v9 = vld [vmem:[%s528_s1 + $0x58] sm:$0xff]  ;;  %v390_v11 = vld [vmem:[%s528_s1 + $0x50] sm:$0xff] }
   0x5   :  { %v381_v12 = vld [vmem:[%s528_s1 + $0x8] sm:$0xff]  ;;  %v380_v14 = vld [vmem:[%s528_s1] sm:$0xff]  ;;  %v304_v18 = vld [vmem:[%s530_s0 + $0x10] sm:$0xf] }
   0x6   :  { %176 = vmatpush.bf16.msra.mxu0 %v386_v2  ;;  %397 = vmatpush.bf16.msra.mxu3 %v386_v2  ;;  %v389_v13 = vld [vmem:[%s528_s1 + $0x48] sm:$0xff]  ;;  %v388_v15 = vld [vmem:[%s528_s1 + $0x40] sm:$0xff]  ;;  %v379_v19 = vld [vmem:[%s530_s0 + $0x14] sm:$0xf0]  ;;  %v252_v2 = vshrl.u32 %v249_v63, 7 }
   0x7   :  { %405 = vmatpush.bf16.msra.mxu2 %v394_v3  ;;  %195 = vmatpush.bf16.msra.mxu1 %v394_v3  ;;  %v296_v16 = vld [vmem:[%s530_s0] sm:$0xf]  ;;  %v377_v17 = vld [vmem:[%s530_s0 + $0x4] sm:$0xf0]  ;;  %v378_v20 = vld [vmem:[%s530_s0 + $0x14] sm:$0xf]  ;;  %v305_v25 = vor.u32 %v379_v19, %v304_v18 }
   0x8   :  { %v306_v21 = vld [vmem:[%s530_s0 + $0x18] sm:$0xf0]  ;;  %v376_v22 = vld [vmem:[%s530_s0 + $0x4] sm:$0xf]  ;;  %v298_v23 = vld [vmem:[%s530_s0 + $0x8] sm:$0xf0]  ;;  %v297_v24 = vor.u32 %v377_v17, %v296_v16 }
   0x9   :  { %v309_v26 = vor.u32 %v378_v20, %v306_v21  ;;  %v301_v27 = vor.u32 %v376_v22, %v298_v23  ;;  %v413_v28 = vld [vmem:[%s529_s2] ss:$0 sm:$0xff]  ;;  %v422_v22 = vmov 0.0  }
   0xa   :  { %177 = vmatpush.bf16.msra.mxu0 %v385_v4  ;;  %398 = vmatpush.bf16.msra.mxu3 %v385_v4  ;;  %v253_v4 = vmul.u32 4, %v252_v2 }
   0xb   :  { %406 = vmatpush.bf16.msra.mxu2 %v393_v5  ;;  %196 = vmatpush.bf16.msra.mxu1 %v393_v5 }
   0xe   :  { %178 = vmatpush.bf16.msra.mxu0 %v384_v6  ;;  %399 = vmatpush.bf16.msra.mxu3 %v384_v6 }
   0xf   :  { %407 = vmatpush.bf16.msra.mxu2 %v392_v7  ;;  %197 = vmatpush.bf16.msra.mxu1 %v392_v7 }
  0x12   :  { %179 = vmatpush.bf16.msra.mxu0 %v383_v8  ;;  %400 = vmatpush.bf16.msra.mxu3 %v383_v8 }
  0x13   :  { %408 = vmatpush.bf16.msra.mxu2 %v391_v9  ;;  %198 = vmatpush.bf16.msra.mxu1 %v391_v9 }
  0x16   :  { %180 = vmatpush.bf16.msra.mxu0 %v382_v10  ;;  %401 = vmatpush.bf16.msra.mxu3 %v382_v10 }
  0x17   :  { %409 = vmatpush.bf16.msra.mxu2 %v390_v11  ;;  %199 = vmatpush.bf16.msra.mxu1 %v390_v11  ;;  %v250_v11 = vand.u32 127, %v249_v63 }
  0x19   :  { %vm257_vm0 = vcmp.ge.s32.totalorder %v250_v11, %v253_v4 }
  0x1a   :  { %181 = vmatpush.bf16.msra.mxu0 %v381_v12  ;;  %402 = vmatpush.bf16.msra.mxu3 %v381_v12  ;;  %v258_v12 = vadd.s32 4, %v253_v4 }
  0x1b   :  { %410 = vmatpush.bf16.msra.mxu2 %v389_v13  ;;  %200 = vmatpush.bf16.msra.mxu1 %v389_v13 }
  0x1c   :  { %vm259_vm1 = vcmp.lt.s32.totalorder %v250_v11, %v258_v12 }
  0x1d   :  { %vm260_vm2 = vmand %vm257_vm0, %vm259_vm1 }
  0x1e   :  { %182 = vmatpush.bf16.msra.mxu0 %v380_v14  ;;  %403 = vmatpush.bf16.msra.mxu3 %v380_v14  ;;  %v374_v23 = vsel %vm260_vm2, 1.0, %v422_v22 }
  0x1f   :  { %411 = vmatpush.bf16.msra.mxu2 %v388_v15  ;;  %201 = vmatpush.bf16.msra.mxu1 %v388_v15 }
  0x21   :  { %183 = vmatmul.bf16.vlgmr.msra.gmra.mxu0 %v297_v24  ;;  %188 = vmatmul.bf16.vlgmr.msra.gmra.mxu3 %v305_v25 }
  0x22   :  { %207 = vmatmul.bf16.vlgmr.msra.gmra.mxu2 %v309_v26  ;;  %202 = vmatmul.bf16.vlgmr.msra.gmra.mxu1 %v301_v27 }
  0x9e   :  { %v184_v29 = vpop.f32.mrf.mxu0 }
  0x9f   :  { %v185_v30 = vadd.f32 %v413_v28, %v184_v29  ;;  %v203_v31 = vpop.f32.mrf.mxu1 }
  0xa1   :  { %v518_v32 = vadd.f32 %v203_v31, %v185_v30 }
  0xa3   :  { %v213_v36 = vmul.f32 %v518_v32, %v518_v32 }
  0xa4   :  { %v189_v33 = vpop.f32.mrf.mxu3 }
  0xa5   :  { %v190_v34 = vadd.f32 %v413_v28, %v189_v33  ;;  %v208_v35 = vpop.f32.mrf.mxu2  ;;  %v217_v43 = vmul.f32 %v213_v36, %v518_v32 }
  0xa6   :  { %v186_v37 = vpop.f32.mrf.mxu0 }
  0xa7   :  { %v209_v38 = vadd.f32 %v208_v35, %v190_v34  ;;  %v187_v39 = vadd.f32 %v413_v28, %v186_v37  ;;  %v205_v40 = vpop.f32.mrf.mxu1  ;;  %v221_v51 = vmul.f32 0.044715, %v217_v43 }
  0xa9   :  { %v215_v41 = vmul.f32 %v209_v38, %v209_v38  ;;  %v206_v42 = vadd.f32 %v205_v40, %v187_v39  ;;  %v225_v57 = vadd.f32 %v221_v51, %v518_v32 }
  0xab   :  { %v219_v44 = vmul.f32 %v215_v41, %v209_v38  ;;  %v214_v45 = vmul.f32 %v206_v42, %v206_v42  ;;  %v229_v62 = vmul.f32 0.7978846, %v225_v57 }
  0xac   :  { %v191_v46 = vpop.f32.mrf.mxu3 }
  0xad   :  { %v218_v47 = vmul.f32 %v214_v45, %v206_v42  ;;  %v192_v48 = vadd.f32 %v413_v28, %v191_v46  ;;  %v223_v49 = vmul.f32 0.044715, %v219_v44  ;;  %v210_v50 = vpop.f32.mrf.mxu2 }
  0xaf   :  { %v211_v52 = vadd.f32 %v210_v50, %v192_v48  ;;  %v227_v53 = vadd.f32 %v223_v49, %v209_v38  ;;  %v222_v54 = vmul.f32 0.044715, %v218_v47 }
  0xb1   :  { %v216_v55 = vmul.f32 %v211_v52, %v211_v52  ;;  %v226_v56 = vadd.f32 %v222_v54, %v206_v42  ;;  %v231_v59 = vmul.f32 0.7978846, %v227_v53 }
  0xb3   :  { %v220_v58 = vmul.f32 %v216_v55, %v211_v52  ;;  %v230_v61 = vmul.f32 0.7978846, %v226_v56  ;;  %414 = vtanh.f32 %v231_v59 }
  0xb5   :  { %v224_v60 = vmul.f32 0.044715, %v220_v58  ;;  %416 = vtanh.f32 %v230_v61 }
  0xb6   :  { %418 = vtanh.f32 %v229_v62 }
  0xb7   :  { %v228_v0 = vadd.f32 %v224_v60, %v211_v52 }
  0xb9   :  { %v232_v1 = vmul.f32 0.7978846, %v228_v0  ;;  %v415_v3 = vpop.eup %414 }
  0xba   :  { %v239_v7 = vadd.f32 1.0, %v415_v3 }
  0xbb   :  { %420 = vtanh.f32 %v232_v1  ;;  %v417_v5 = vpop.eup %416 }
  0xbc   :  { %v419_v6 = vpop.eup %418  ;;  %v238_v10 = vadd.f32 1.0, %v417_v5  ;;  %v243_v14 = vmul.f32 0.5, %v239_v7 }
  0xbd   :  { %v237_v15 = vadd.f32 1.0, %v419_v6 }
  0xbe   :  { %v242_v17 = vmul.f32 0.5, %v238_v10  ;;  %v247_v18 = vmul.f32 %v243_v14, %v209_v38 }
  0xbf   :  { %v241_v19 = vmul.f32 0.5, %v237_v15 }
  0xc0   :  { %v246_v20 = vmul.f32 %v242_v17, %v206_v42 }
  0xc1   :  { %v421_v8 = vpop.eup %420  ;;  %v245_v21 = vmul.f32 %v241_v19, %v518_v32 }
  0xc2   :  { %v240_v9 = vadd.f32 1.0, %v421_v8 }
  0xc4   :  { %v244_v13 = vmul.f32 0.5, %v240_v9 }
  0xc6   :  { %v248_v16 = vmul.f32 %v244_v13, %v211_v52 }
  0xc8   :  { %280 = vmatpush.msrb.mxu2 %v248_v16 }
  0xca   :  { %281 = vmatpush.msrb.mxu2 %v247_v18 }
  0xcc   :  { %282 = vmatpush.msrb.mxu2 %v246_v20 }
  0xce   :  { %283 = vmatpush.msrb.mxu2 %v245_v21 }
  0xcf   :  { %375 = vmatmul.msk.f32.vlgmr.msrb.gmra.mxu2 %vm264_vm3, %v374_v23 }
 0x152   :  { %v285_v24 = vpop.f32.mrf.mxu2 }
 0x153   :  { %289 = vst [vmem:[%s531_s3] sm:$0xff] %v285_v24 }

</bundles_post_ra>
